<compile_context>
chip_gen: v5e
topology: v5e:2x2
jax: 0.10.0
libtpu: 0.0.40
codegen_flags: <defaults>
</compile_context>

<pallas_src>
import functools
import math

import jax
import jax.numpy as jnp
from jax.experimental import pallas as pl
from jax.experimental.pallas import tpu as pltpu


_TARGET_BLOCK_BYTES = 3 * 1024 * 1024   # ~3 MiB of input bytes per grid step


def _cdiv(a, b):
    return (a + b - 1) // b


def _round_up(a, b):
    return _cdiv(a, b) * b


def _vmem_cap_bytes():
    """Generation-aware VMEM cap: ~70% of physical VMEM, v7x-safe fallback."""
    try:
        phys = int(pltpu.get_tpu_info().vmem_capacity_bytes)
        return int(0.7 * phys)
    except Exception:
        # Fallback assumes the smallest part (v7x: 64 MiB per TensorCore);
        # 44 MiB is also comfortably valid on 128 MiB v5e/v6e.
        return 44 * 1024 * 1024


def _choose_tile_m(m, d, in_itemsize, out_itemsize, vmem_cap):
    """Pick the row-tile size tm and report the per-row VMEM footprint."""
    # Per-step VMEM per row of the tile:
    #   2x double-buffered input + 2x double-buffered output
    #   + ~3 f32 full-tile temporaries (x_f32, x*x, y) the compiler may spill.
    per_row = d * (2 * in_itemsize + 2 * out_itemsize + 3 * 4)

    # HBM-roofline target: ~3 MiB of input bytes per block.
    tm_target = max(8, (_TARGET_BLOCK_BYTES // max(1, d * in_itemsize)) // 8 * 8)
    # VMEM constraint: keep the working set within ~60% of the cap (headroom
    # for compiler scratch and the 1.5x margin applied to vmem_limit_bytes).
    tm_vmem = max(8, (int(0.6 * vmem_cap) // per_row) // 8 * 8)
    tm_cap = min(tm_target, tm_vmem)

    # Minimize padding: fix the number of grid steps, then split rows evenly
    # instead of padding M up to a full tm_cap tile.
    n_steps = _cdiv(m, tm_cap)
    # v7x has two TensorCores: keep >= 2 "parallel" grid steps when possible.
    if n_steps < 2 and m > 8:
        n_steps = 2
    tm = max(8, _round_up(_cdiv(m, n_steps), 8))
    return tm, per_row


def _layernorm_kernel(x_ref, g_ref, b_ref, o_ref, *, eps, n_feat, bessel):
    """One row-tile of LayerNorm.

    x_ref : (TM, D)  input rows
    g_ref : (1,  D)  scale (a_2)
    b_ref : (1,  D)  shift (b_2)
    o_ref : (TM, D)  output rows
    """
    x = x_ref[...].astype(jnp.float32)                              # (TM, D)

    # Fused single pass over x for both moments (one dependent XLU chain).
    s1 = jnp.sum(x, axis=-1, keepdims=True)                         # (TM, 1)
    s2 = jnp.sum(x * x, axis=-1, keepdims=True)                     # (TM, 1)
    mean = s1 * (1.0 / n_feat)
    # Unbiased variance (Bessel's correction), matching torch.std default.
    # Clamp tiny negatives caused by one-pass cancellation.
    var = jnp.maximum((s2 - s1 * mean) * bessel, 0.0)
    std = jnp.sqrt(var)
    inv = 1.0 / (std + eps)                                         # (TM, 1)

    g = g_ref[...].astype(jnp.float32)                              # (1, D)
    b = b_ref[...].astype(jnp.float32)                              # (1, D)
    y = (x - mean) * inv * g + b
    o_ref[...] = y.astype(o_ref.dtype)


def layer_norm(x, gamma, beta, *, eps=1e-6):
    """x: (..., D); gamma, beta: (D,). Returns LayerNorm(x) with torch semantics."""
    *lead, d = x.shape
    m = math.prod(lead) if lead else 1
    x2 = x.reshape(m, d)

    in_it = jnp.dtype(x.dtype).itemsize
    out_it = in_it
    vmem_cap = _vmem_cap_bytes()
    tm, per_row = _choose_tile_m(m, d, in_it, out_it, vmem_cap)

    m_pad = _round_up(m, tm)
    if m_pad != m:
        # Padded (zero) rows come out of the kernel as `beta`, not zero;
        # they are sliced off below so this is harmless.
        x2 = jnp.pad(x2, ((0, m_pad - m), (0, 0)))

    g2 = gamma.reshape(1, d)
    b2 = beta.reshape(1, d)

    # torch.std with N==1 yields NaN (0/0); mirror that instead of raising.
    bessel = 1.0 / (d - 1) if d > 1 else float("nan")
    kernel = functools.partial(_layernorm_kernel, eps=float(eps),
                               n_feat=d, bessel=bessel)

    # Per-step working set (blocks + f32 temps) + tiny double-buffered params,
    # with 1.5x headroom, capped generation-aware.
    param_bytes = 2 * 2 * d * max(jnp.dtype(gamma.dtype).itemsize, 4)
    needed = tm * per_row + param_bytes
    vmem_limit = int(min(vmem_cap, max(int(1.5 * needed), 16 * 1024 * 1024)))

    out2 = pl.pallas_call(
        kernel,
        out_shape=jax.ShapeDtypeStruct((m_pad, d), x.dtype),
        grid_spec=pltpu.PrefetchScalarGridSpec(
            num_scalar_prefetch=0,
            grid=(m_pad // tm,),
            in_specs=[
                pl.BlockSpec((tm, d), lambda i: (i, 0)),
                pl.BlockSpec((1, d), lambda i: (0, 0)),
                pl.BlockSpec((1, d), lambda i: (0, 0)),
            ],
            out_specs=pl.BlockSpec((tm, d), lambda i: (i, 0)),
        ),
        compiler_params=pltpu.CompilerParams(
            dimension_semantics=("parallel",),
            vmem_limit_bytes=vmem_limit,
        ),
    )(x2, g2, b2)

    return out2[:m].reshape(*lead, d)


def _reference(x, gamma, beta, eps=1e-6):
    """Plain-JAX reference mirroring the PyTorch forward."""
    xf = x.astype(jnp.float32)
    mean = jnp.mean(xf, axis=-1, keepdims=True)
    std = jnp.std(xf, axis=-1, keepdims=True, ddof=1)   # unbiased, like torch.std
    out = gamma * (xf - mean) / (std + eps) + beta
    return out.astype(x.dtype)


if __name__ == "__main__":
    batch, seq, features = 2, 8, 128   # lane-dense feature dim (multiple of 128)
    eps = 1e-6

    key = jax.random.PRNGKey(0)
    kx, kg, kb = jax.random.split(key, 3)

    x = jax.random.normal(kx, (batch, seq, features), dtype=jnp.float32)
    # Non-trivial affine params so the scale/shift path is actually exercised.
    gamma = 1.0 + 0.1 * jax.random.normal(kg, (features,), dtype=jnp.float32)
    beta = 0.1 * jax.random.normal(kb, (features,), dtype=jnp.float32)

    out = layer_norm(x, gamma, beta, eps=eps)
    out = jax.block_until_ready(out)

    ref = _reference(x, gamma, beta, eps=eps)
    assert out.shape == (batch, seq, features)
    assert jnp.allclose(out, ref, atol=1e-5, rtol=1e-5), \
        float(jnp.max(jnp.abs(out - ref)))

    print("KERNEL_OK")
</pallas_src>

<mosaic_0001>
module attributes {stable_mosaic.version = 11 : i64} {
  func.func @_layernorm_kernel(%arg0: i32, %arg1: memref<8x128xf32, #tpu.memory_space<vmem>>, %arg2: memref<1x128xf32, #tpu.memory_space<vmem>>, %arg3: memref<1x128xf32, #tpu.memory_space<vmem>>, %arg4: memref<8x128xf32, #tpu.memory_space<vmem>>) attributes {dimension_semantics = [#tpu.dimension_semantics<parallel>], iteration_bounds = array<i64: 2>, scalar_prefetch = 0 : i64, scratch_operands = 0 : i64, tpu.core_type = #tpu.core_type<tc>, window_params = [{transform_indices = @transform_0, window_bounds = array<i64: 8, 128>}, {pipeline_mode = #tpu.pipeline_mode<synchronous>, transform_indices = @transform_1, window_bounds = array<i64: 1, 128>}, {pipeline_mode = #tpu.pipeline_mode<synchronous>, transform_indices = @transform_2, window_bounds = array<i64: 1, 128>}, {transform_indices = @transform_3, window_bounds = array<i64: 8, 128>}]} {
    %c0 = arith.constant 0 : index
    %c0_0 = arith.constant 0 : index
    %0 = vector.load %arg1[%c0, %c0_0] : memref<8x128xf32, #tpu.memory_space<vmem>>, vector<8x128xf32>
    %cst = arith.constant dense<0.000000e+00> : vector<8xf32>
    %1 = vector.multi_reduction <add>, %0, %cst [1] : vector<8x128xf32> to vector<8xf32>
    %2 = vector.shape_cast %1 : vector<8xf32> to vector<8x1xf32>
    %3 = arith.mulf %0, %0 : vector<8x128xf32>
    %cst_1 = arith.constant dense<0.000000e+00> : vector<8xf32>
    %4 = vector.multi_reduction <add>, %3, %cst_1 [1] : vector<8x128xf32> to vector<8xf32>
    %5 = vector.shape_cast %4 : vector<8xf32> to vector<8x1xf32>
    %cst_2 = arith.constant 7.812500e-03 : f32
    %6 = vector.broadcast %cst_2 : f32 to vector<8x1xf32>
    %7 = arith.mulf %2, %6 : vector<8x1xf32>
    %8 = arith.mulf %2, %7 : vector<8x1xf32>
    %9 = arith.subf %5, %8 : vector<8x1xf32>
    %cst_3 = arith.constant 0.00787401571 : f32
    %10 = vector.broadcast %cst_3 : f32 to vector<8x1xf32>
    %11 = arith.mulf %9, %10 : vector<8x1xf32>
    %cst_4 = arith.constant 0.000000e+00 : f32
    %12 = vector.broadcast %cst_4 : f32 to vector<8x1xf32>
    %13 = arith.maximumf %11, %12 : vector<8x1xf32>
    %14 = math.sqrt %13 : vector<8x1xf32>
    %cst_5 = arith.constant 9.99999997E-7 : f32
    %15 = vector.broadcast %cst_5 : f32 to vector<8x1xf32>
    %16 = arith.addf %14, %15 : vector<8x1xf32>
    %cst_6 = arith.constant 1.000000e+00 : f32
    %17 = vector.broadcast %cst_6 : f32 to vector<8x1xf32>
    %18 = arith.divf %17, %16 : vector<8x1xf32>
    %c0_7 = arith.constant 0 : index
    %c0_8 = arith.constant 0 : index
    %19 = vector.load %arg2[%c0_7, %c0_8] : memref<1x128xf32, #tpu.memory_space<vmem>>, vector<1x128xf32>
    %c0_9 = arith.constant 0 : index
    %c0_10 = arith.constant 0 : index
    %20 = vector.load %arg3[%c0_9, %c0_10] : memref<1x128xf32, #tpu.memory_space<vmem>>, vector<1x128xf32>
    %21 = vector.broadcast %7 : vector<8x1xf32> to vector<8x128xf32>
    %22 = arith.subf %0, %21 : vector<8x128xf32>
    %23 = vector.broadcast %18 : vector<8x1xf32> to vector<8x128xf32>
    %24 = arith.mulf %22, %23 : vector<8x128xf32>
    %25 = vector.broadcast %19 : vector<1x128xf32> to vector<8x128xf32>
    %26 = arith.mulf %24, %25 : vector<8x128xf32>
    %27 = vector.broadcast %20 : vector<1x128xf32> to vector<8x128xf32>
    %28 = arith.addf %26, %27 : vector<8x128xf32>
    %c0_11 = arith.constant 0 : index
    %c0_12 = arith.constant 0 : index
    %29 = vector.load %arg4[%c0_11, %c0_12] : memref<8x128xf32, #tpu.memory_space<vmem>>, vector<8x128xf32>
    tpu.vector_store %arg4[%c0_11, %c0_12], %28 {strides = array<i32>} : memref<8x128xf32, #tpu.memory_space<vmem>>, vector<8x128xf32>,
    return
  }
  func.func @transform_0(%arg0: i32) -> (i32, i32) {
    %c0_i32 = arith.constant 0 : i32
    %c0_i32_0 = arith.constant 0 : i32
    return %arg0, %c0_i32 : i32, i32
  }
  func.func @transform_1(%arg0: i32) -> (i32, i32) {
    %c0_i32 = arith.constant 0 : i32
    %c0_i32_0 = arith.constant 0 : i32
    %c0_i32_1 = arith.constant 0 : i32
    return %c0_i32, %c0_i32_0 : i32, i32
  }
  func.func @transform_2(%arg0: i32) -> (i32, i32) {
    %c0_i32 = arith.constant 0 : i32
    %c0_i32_0 = arith.constant 0 : i32
    %c0_i32_1 = arith.constant 0 : i32
    return %c0_i32, %c0_i32_0 : i32, i32
  }
  func.func @transform_3(%arg0: i32) -> (i32, i32) {
    %c0_i32 = arith.constant 0 : i32
    %c0_i32_0 = arith.constant 0 : i32
    return %arg0, %c0_i32 : i32, i32
  }
}

</mosaic_0001>

<bundles_post_ra>
// kernel: tpu_custom_call.1
= control target key start
LH: loop header
LB: loop body
LE: loop exit
PB: predicated region body
PF: predicated region fallthrough
CT: control target
= control target key end

     0   :  { %8 = vsyncpa [#allocation3], 0  ;;  %s726_s0 = inlined_call_operand.hbm [shape: f32[16,128], index: 0, kind: input, shape index: {}]   ;;  %s727_s1 = inlined_call_operand.hbm [shape: f32[1,128], index: 1, kind: input, shape index: {}]   ;;  %s728_s2 = inlined_call_operand.vmem [shape: f32[1,128], index: 2, kind: input, shape index: {}]   ;;  %s729_s3 = inlined_call_operand.hbm [shape: f32[16,128], index: 3, kind: output, shape index: {}]  }
   0x1   :  { %10 = vsyncpa [#allocation3 + $0x1], 0 }
   0x2   :  { %11 = vsyncpa [#allocation6], 0 }
   0x3   :  { %12 = vsyncpa [#allocation4], 0 }
   0x4   :  { %14 = vsyncpa [#allocation4 + $0x1], 0  ;;  %s581_s12 = smov 0   ;;  %s583_s13 = smov 0  }
   0x5   :  { %s585_s14 = smov 0   ;;  %s587_s15 = smov 0  }
   0x6 LB: > { %s602_s16 = sadd.s32 4294967295, %s558_s15   ;;  %s351_s17 = sadd.s32 4294967294, %s558_s15   ;;  %s558_s15 = sphi %s587_s15, %s739_s15   ;;  %s554_s14 = sphi %s585_s14, %s738_s14   ;;  %s550_s13 = sphi %s583_s13, %s737_s13   ;;  %s546_s12 = sphi %s581_s12, %s736_s12  }
   0x7   : > { %p40_p0 = scmp.ne.s32.totalorder %s550_s13, %s546_s12  ;;  %p41_p1 = scmp.eq.s32.totalorder %s602_s16, 0 }
   0x8   : > { %p106_p2 = scmp.eq.s32.totalorder %s602_s16, 1  ;;  %p112_p3 = scmp.eq.s32.totalorder %s351_s17, 1 }
   0x9   : > { %p611_p4 = por %p41_p1, %p40_p0  ;;  %p352_p5 = scmp.ge.s32.totalorder %s558_s15, 1 }
   0xa   : > { %p616_p6 = por %p112_p3, %p40_p0  ;;  %p119_p7 = scmp.lt.s32.totalorder %s558_s15, 3 }
   0xb   : > { %s131_s22 = sshll.u32 %s727_s1, 4  ;;  %s560_s24 = smov [#allocation5]   ;;  %s132_s22 = int_to_ptr.hbm [resolvable:$true] %s131_s22 }
   0xc   : > { %p624_p8 = pnand %p352_p5, %p119_p7  ;;  %s133_s25 = sshll.u32 %s560_s24, 4  ;;  %s134_s25 = int_to_ptr.vmem [resolvable:$true] %s133_s25 }
   0xd   : > { %s634_s26 = sadd.s32 1, %s558_s15   ;;  %s27_s27 = sadd.s32 1, %s554_s14 }
   0xe   : > { %p373_p10 = pneg %p624_p8  ;;  %s24_s28 = ssub.s32 %s558_s15, %s634_s26 }
   0xf   : > { %p25_p12 = scmp.eq.s32.totalorder %s24_s28, 0  ;;  %p34_p13 = scmp.ne.s32.totalorder %s554_s14, %s550_s13 }
  0x10   : > { %p374_p11 = pnand %p373_p10, %p41_p1  ;;  %p35_p0 = scmp.eq.s32.totalorder %s558_s15, 0 }
  0x11   : > { %s643_s29 = scalar_select %p25_p12, %s554_s14, %s27_s27  }
  0x12   : > { %376 = dma.hbm_to_vmem [thread:$0]  (!%p374_p11), %s132_s22, 16, %s134_s25, [#allocation6]  }
  0x13   : > { %p647_p3 = por %p106_p2, %p34_p13  ;;  %p386_p5 = scmp.lt.s32.totalorder %s558_s15, 2 }
  0x14   : > { %s147_s4 = sand.u32 1, %s554_s14   ;;  %s356_s5 = sshll.u32 %s558_s15, 3 }
  0x15   : > { %p36_p7 = por %p35_p0, %p34_p13  ;;  %s355_s6 = sshll.u32 %s147_s4, 3 }
  0x16   : > { %s155_s9 = scalar_lea.hbm %s726_s0, %s356_s5  ;;  %s151_s11 = scalar_lea.vmem [#allocation2], %s355_s6 }
  0x17   : > { %s157_s10 = sshll.u32 %s155_s9, 4  ;;  %s159_s17 = sshll.u32 %s151_s11, 4  ;;  %s158_s10 = int_to_ptr.hbm [resolvable:$true] %s157_s10  ;;  %s160_s17 = int_to_ptr.vmem [resolvable:$true] %s159_s17 }
  0x18   : > { %p657_p10 = pnand %p386_p5, %p36_p7  ;;  %s148_s21 = scalar_lea.sflag [#allocation3], %s147_s4 }
  0x19   : > { %s458_s22 = sshra.s32 %s158_s10, 4  ;;  %s465_s28 = scalar_lea.hbm %s726_s0, 16  ;;  %s459_s22 = int_to_ptr.hbm [resolvable:$true] %s458_s22 }
  0x1a   : > { %s460_s24 = scalar_lea.hbm %s459_s22, 8  ;;  %p462_p11 = pneg %p657_p10 }
  0x1b   : > { %p461_p2 = scmp.ne.s32.totalorder %s459_s22, %s460_s24  ;;  %p466_p0 = scmp.lt.s32.totalorder %s459_s22, %s726_s0 }
  0x1c   : > { %p467_p5 = scmp.lt.s32.totalorder %s465_s28, %s460_s24 }
  0x1d   : > { %p463_p12 = pnand %p462_p11, %p461_p2 }
  0x1e   : > { %p468_p7 = por %p467_p5, %p466_p0 }
  0x1f   : > { %p464_p13 = pneg %p463_p12 }
  0x21   : > { %p469_p9 = pnand %p468_p7, %p464_p13 }
  0x23   : > { %472 = shalt.err (!%p469_p9)
}
  0x24   : > { %380 = dma.hbm_to_vmem [thread:$0]  (!%p657_p10), %s158_s10, 128, %s160_s17, %s148_s21  }
  0x25   : > { %168 = sbr.rel (%p624_p8) target bundleno = 225 (0xe1), region = 32  ;;  %s674_s4 = sand.u32 (!%p624_p8), 1, %s550_s13  }
  0x26   : > { %s358_s7 = sshll.u32 (!%p624_p8), %s674_s4, 3  ;;  %s171_s8 = scalar_lea.sflag (!%p624_p8), [#allocation3], %s674_s4 }
  0x27   : > { %s174_s9 = scalar_lea.vmem (!%p624_p8), [#allocation2], %s358_s7 }
  0x2a   : > { %533 = dma.done.wait (%p611_p4), %s171_s8, 128  }
  0x2b   : > { %535 = vsyncadd (%p611_p4), %s171_s8, 4294967168 }
  0x2c   : > { %537 = dma.done.wait (%p41_p1), [#allocation6], 16  }
  0x2d   : > { %539 = vsyncadd (%p41_p1), [#allocation6], 4294967280  ;;  %v203_v0 = vld [vmem:[%s174_s9] sm:$0xff]  ;;  %s362_s18 = sshll.u32 %s602_s16, 3  ;;  %v422_v30 = vld [vmem:[#allocation5] ss:$0 sm:$0xff] }
  0x2e   : > { %204 = vadd.xlane.f32.xlu0 %v203_v0  ;;  %v206_v1 = vmul.f32 %v203_v0, %v203_v0  ;;  %s266_s11 = scalar_lea.hbm %s729_s3, %s362_s18  ;;  %v423_v33 = vld [vmem:[%s728_s2] ss:$0 sm:$0xff]  ;;  %s202_s16 = scalar_lea.vmem [#allocation7], %s358_s7 }
  0x2f   : > { %s268_s21 = sshll.u32 %s202_s16, 4  ;;  %s270_s22 = sshll.u32 %s266_s11, 4  ;;  %s269_s21 = int_to_ptr.vmem [resolvable:$true] %s268_s21  ;;  %s271_s22 = int_to_ptr.hbm [resolvable:$true] %s270_s22 }
  0x30   : > { %s256_s24 = scalar_lea.sflag [#allocation4], %s674_s4  ;;  %s502_s25 = sshra.s32 %s271_s22, 4  ;;  %s503_s25 = int_to_ptr.hbm [resolvable:$true] %s502_s25 }
  0x31   : > { %s504_s27 = scalar_lea.hbm %s503_s25, 8  ;;  %s508_s6 = scalar_lea.hbm %s729_s3, 16 }
  0x32   : > { %p505_p1 = scmp.ne.s32.totalorder %s503_s25, %s504_s27  ;;  %p509_p9 = scmp.lt.s32.totalorder %s503_s25, %s729_s3 }
  0x33   : > { %p510_p10 = scmp.lt.s32.totalorder %s508_s6, %s504_s27 }
  0x34   : > { %p506_p4 = pnand %p505_p1, %p647_p3 }
  0x35   : > { %p511_p2 = por %p510_p10, %p509_p9 }
  0x36   : > { %207 = vadd.xlane.f32.xlu0 %v206_v1  ;;  %p507_p8 = pneg %p506_p4 }
  0x38   : > { %p512_p11 = pnand %p511_p2, %p507_p8 }
  0xa1   : > { %v205_v2 = vpop.xlane.xlu0 %204 }
  0xa2   : > { %v209_v3 = vmul.f32 0.0078125, %v205_v2 }
  0xa4   : > { %v210_v4 = vmul.f32 %v209_v3, %v205_v2  ;;  %v244_v28 = vsub.f32 %v203_v0, %v209_v3 }
  0xa9   : > { %v208_v5 = vpop.xlane.xlu0 %207 }
  0xaa   : > { %v211_v6 = vsub.f32 %v208_v5, %v210_v4 }
  0xac   : > { %v212_v7 = vmul.f32 0.007874016, %v211_v6 }
  0xae   : > { %v213_v8 = vmax.f32 %v212_v7, 0.0 }
  0xb0   : > { %424 = vrsqrt.f32 %v213_v8  ;;  %vm221_vm0 = vcmp.eq.f32.partialorder %v213_v8, inf  ;;  %v224_v16 = vand.u32 2147483648, %v213_v8  ;;  %vm223_vm1 = vcmp.eq.f32.partialorder %v213_v8, 0.0 }
  0xb6   : > { %v425_v9 = vpop.eup %424 }
  0xb7   : > { %v215_v10 = vmul.f32 %v425_v9, %v213_v8 }
  0xb9   : > { %v216_v11 = vmul.f32 %v425_v9, %v215_v10 }
  0xbb   : > { %v217_v12 = vmul.f32 0.5, %v216_v11 }
  0xbd   : > { %v218_v13 = vsub.f32 1.5, %v217_v12 }
  0xbf   : > { %v219_v14 = vmul.f32 %v425_v9, %v218_v13 }
  0xc1   : > { %v220_v15 = vmul.f32 %v219_v14, %v213_v8 }
  0xc3   : > { %v222_v17 = vsel %vm221_vm0, %v213_v8, %v220_v15 }
  0xc4   : > { %v225_v18 = vsel %vm223_vm1, %v224_v16, %v222_v17 }
  0xc5   : > { %v226_v19 = vadd.f32 1e-06, %v225_v18 }
  0xc7   : > { %426 = vrcp.f32 %v226_v19  ;;  %v238_v23 = vand.u32 2147483648, %v226_v19  ;;  %v236_v25 = vand.u32 2147483647, %v226_v19  ;;  %vm232_vm3 = vweird.f32 %v226_v19 }
  0xc9   : > { %v239_v27 = vor.u32 1.1754944e-38, %v238_v23  ;;  %vm237_vm5 = vcmp.eq.f32.partialorder %v236_v25, 8.507059e+37 }
  0xcd   : > { %v427_v20 = vpop.eup %426 }
  0xce   : > { %v228_v21 = vmul.f32 %v427_v20, %v226_v19  ;;  %vm233_vm2 = vweird.f32 %v427_v20 }
  0xcf   : > { %vm234_vm4 = vmor %vm232_vm3, %vm233_vm2 }
  0xd0   : > { %v229_v22 = vsub.f32 1.0, %v228_v21 }
  0xd2   : > { %v230_v24 = vmul.f32 %v427_v20, %v229_v22 }
  0xd4   : > { %v231_v26 = vadd.f32 %v427_v20, %v230_v24 }
  0xd6   : > { %v235_v29 = vsel %vm234_vm4, %v427_v20, %v231_v26 }
  0xd7   : > { %v240_v31 = vsel %vm237_vm5, %v239_v27, %v235_v29 }
  0xd8   : > { %v245_v32 = vmul.f32 %v244_v28, %v240_v31 }
  0xda   : > { %v249_v34 = vmul.f32 %v422_v30, %v245_v32 }
  0xdc   : > { %v253_v35 = vadd.f32 %v423_v33, %v249_v34 }
  0xde   : > { %254 = vst [vmem:[%s202_s16] sm:$0xff] %v253_v35 }
  0xdf   : > { %515 = shalt.err (!%p512_p11)
}
  0xe0   : > { %371 = dma.vmem_to_hbm [thread:$0]  (%p647_p3), %s269_s21, 128, %s271_s22, %s256_s24  }
  0xe1 PF: > { %s282_s4 = sand.u32 1, %s546_s12   ;;  %p735_p12 = scmp.ge.s32.totalorder %s558_s15, 2 }
  0xe2   : > { %s283_s9 = scalar_lea.sflag [#allocation4], %s282_s4 }
  0xe3   : > { %p382_p13 = pnand %p735_p12, %p616_p6 }
  0xe5   : > { %p383_p0 = pneg %p382_p13 }
  0xe7   : > { %541 = dma.done.wait (%p383_p0), %s283_s9, 128  }
  0xe8   : > { %543 = vsyncadd (%p383_p0), %s283_s9, 4294967168  ;;  %p17_p5 = scmp.ge.s32.totalorder %s634_s26, 4   ;;  %s736_s12 = smov %s550_s13 }
  0xe9   : > { %s737_s13 = smov %s554_s14  ;;  %s738_s14 = smov %s643_s29 }
  0xea   : > { %s739_s15 = smov %s634_s26  ;;  %19 = sbr.rel (!%p17_p5) target bundleno = 6 (0x6), region = 81 }
  0xef   :  { %289 = vsyncpa [#allocation3], 1 }
  0xf0   :  { %291 = vsyncpa [#allocation3 + $0x1], 1 }
  0xf1   :  { %292 = vsyncpa [#allocation6], 1 }
  0xf2   :  { %293 = vsyncpa [#allocation4], 1 }
  0xf3   :  { %295 = vsyncpa [#allocation4 + $0x1], 1 }

</bundles_post_ra>
